<compile_context>
chip_gen: v6e
topology: v6e:2x2x1
jax: 0.10.0
libtpu: 0.0.40
codegen_flags: <defaults>
</compile_context>

<pallas_src>
import functools

import numpy as np

import jax
import jax.numpy as jnp
from jax import lax
from jax.experimental import pallas as pl
from jax.experimental.pallas import tpu as pltpu


# --------------------------------------------------------------------------
# Host-side helpers
# --------------------------------------------------------------------------
def _round_up(x, m):
    return ((x + m - 1) // m) * m


def _cdiv(a, b):
    return (a + b - 1) // b


def _idct_rows_np(N, rows):
    """Selected rows of the orthonormal inverse DCT-II (DCT-III) matrix.

    Built on host in float64 so the cosine phase pi*(2n+1)*k/(2N) does not
    lose accuracy for large N, then cast to float32.  Only the d selected
    rows are materialized (d x N, never N x N).
    """
    rows = np.asarray(rows, dtype=np.float64).reshape(-1, 1)
    k = np.arange(N, dtype=np.float64)[None, :]
    C = np.sqrt(2.0 / N) * np.cos(np.pi * (2.0 * rows + 1.0) * k / (2.0 * N))
    C[:, 0] = 1.0 / np.sqrt(N)
    return C.astype(np.float32)


def _idct_full_matrix_np(N):
    """Full orthonormal IDCT matrix (reference / verification only)."""
    n = np.arange(N, dtype=np.float64)[:, None]
    k = np.arange(N, dtype=np.float64)[None, :]
    C = np.sqrt(2.0 / N) * np.cos(np.pi * (2.0 * n + 1.0) * k / (2.0 * N))
    C[:, 0] = 1.0 / np.sqrt(N)
    return C.astype(np.float32)


def _vmem_capacity_bytes():
    """Per-core VMEM capacity; conservative 64 MiB (v7x) fallback."""
    try:
        info = pltpu.get_tpu_info()
        cap = getattr(info, "vmem_capacity_bytes", None)
        if cap:
            return int(cap)
    except Exception:
        pass
    return 64 << 20


def _pick_k_tile(K, cap):
    """Largest multiple-of-128 divisor of K (<= cap), preferring >=2 blocks
    so the v7x megacore 'parallel' axis has work for both cores.
    Returns None -> use a single full-K block (no padding of M ever)."""
    if K % 128 != 0:
        return None
    divs = [t for t in range(128, min(cap, K) + 1, 128) if K % t == 0]
    if not divs:
        return None
    multi = [t for t in divs if K // t >= 2]
    return max(multi) if multi else max(divs)


# --------------------------------------------------------------------------
# Kernels: output block stays resident across the N (reduction) grid axis and
# is accumulated in place (output dtype is f32, so no scratch accumulator).
# --------------------------------------------------------------------------
def _sketch_kernel(c_ref, m_ref, o_ref, *, block_n, n_valid, mask_n, resident_c):
    # c_ref: (d_pad, N_pad) if resident_c else (d_pad, block_n)
    # m_ref: (block_n, tk)   streamed tile of M (may overrun N on last block)
    # o_ref: (d_pad, tk)     f32 output block, resident across the reduction
    n = pl.program_id(1)

    @pl.when(n == 0)
    def _():
        o_ref[...] = jnp.zeros_like(o_ref)

    if resident_c:
        start = pl.multiple_of(n * block_n, block_n)
        c = c_ref[:, pl.ds(start, block_n)]
    else:
        c = c_ref[...]

    m = m_ref[...]
    if mask_n:
        # Last reduction block overruns N: zero the garbage tail so stale
        # VMEM (possibly NaN) never reaches the MXU.
        row = n * block_n + lax.broadcasted_iota(jnp.int32, m.shape, 0)
        m = jnp.where(row < n_valid, m, jnp.zeros_like(m))

    o_ref[...] += jnp.dot(c, m, preferred_element_type=jnp.float32)


def _sketch_t_kernel(m_ref, ct_ref, o_ref, *, block_n, n_valid, mask_n, resident_c):
    # Transposed contraction: out = M_t @ C_scaled.T (M_t is (K, N)).
    # m_ref:  (tr, block_n)  streamed tile of M_t
    # ct_ref: (N_pad, d_pad) if resident_c else (block_n, d_pad)
    # o_ref:  (tr, d_pad)    f32 output block (lane-dense d_pad)
    n = pl.program_id(1)

    @pl.when(n == 0)
    def _():
        o_ref[...] = jnp.zeros_like(o_ref)

    if resident_c:
        start = pl.multiple_of(n * block_n, block_n)
        ct = ct_ref[pl.ds(start, block_n), :]
    else:
        ct = ct_ref[...]

    m = m_ref[...]
    if mask_n:
        col = n * block_n + lax.broadcasted_iota(jnp.int32, m.shape, 1)
        m = jnp.where(col < n_valid, m, jnp.zeros_like(m))

    o_ref[...] += jnp.dot(m, ct, preferred_element_type=jnp.float32)


# --------------------------------------------------------------------------
# Wrapper
# --------------------------------------------------------------------------
class SRFTSketchOpPallas:
    """JAX/Pallas port of SRFTSketchOp: a d x N sketching operator."""

    K_TILE_MAX = 1024  # K / row tile cap (lane-dense, multiple of 128)

    def __init__(self, d, N, key, compute_dtype=jnp.float32, n_tile_max=1024):
        self.d = d
        self.N = N
        self.compute_dtype = jnp.dtype(compute_dtype)

        # n_tile_max must be 128 * 2^k so that halving keeps lane-aligned
        # tiles that divide it (keeps all C block accesses in bounds).
        assert n_tile_max >= 128 and n_tile_max % 128 == 0
        assert ((n_tile_max // 128) & ((n_tile_max // 128) - 1)) == 0
        self.n_tile_max = n_tile_max

        k_D, k_P = jax.random.split(key)
        # D = 2 * (rand(N) > 0.5) - 1   (random +/-1 signs, non-trainable)
        self.D = 2.0 * (jax.random.uniform(k_D, (N,)) > 0.5).astype(jnp.float32) - 1.0
        # P = np.random.choice(N, d)    (d indices sampled with replacement)
        self.P = jax.random.randint(k_P, (d,), 0, N)

        D_np = np.asarray(self.D)
        P_np = np.asarray(self.P)

        # Fold D into the d selected IDCT rows: C[P,:] @ diag(D) == C[P,:] * D.
        C_rows = _idct_rows_np(N, P_np) * D_np[None, :]          # (d, N)

        # Pad the small operator once at init (zero padding is exact).
        self.d_pad8 = _round_up(d, 8)       # sublane-aligned rows (C @ M path)
        self.d_pad128 = _round_up(d, 128)   # lane-dense cols (M_t @ C.T path)
        self.N_pad = N if N <= n_tile_max else _round_up(N, n_tile_max)

        C_row = np.zeros((self.d_pad8, self.N_pad), np.float32)
        C_row[:d, :N] = C_rows
        C_colT = np.zeros((self.N_pad, self.d_pad128), np.float32)
        C_colT[:N, :d] = C_rows.T
        self.C_row = jnp.asarray(C_row, dtype=self.compute_dtype)
        self.C_colT = jnp.asarray(C_colT, dtype=self.compute_dtype)

    # ------------------------------------------------------------------
    def _plan_n(self, tile_cols_m, tile_rows_m, c_total_bytes, c_row_major,
                m_itm, c_itm, out_block_bytes):
        """Choose the N tile, C residency, and vmem limit for one call.

        tile_cols_m / tile_rows_m: the non-N extent of the streamed M tile
        (columns for C@M, rows for M_t@C.T).  Returns (TN, n_blocks, mask_n,
        resident_c, vmem_limit_bytes).
        """
        N = self.N
        cap = _vmem_capacity_bytes()
        budget = int(0.80 * cap)

        def ws(tn, resident):
            if resident:
                c_part = 2 * c_total_bytes                 # Pallas double-buffers
            elif c_row_major:
                c_part = 2 * self.d_pad8 * tn * c_itm
            else:
                c_part = 2 * tn * self.d_pad128 * c_itm
            m_part = 2 * tn * tile_cols_m * m_itm if c_row_major \
                else 2 * tile_rows_m * tn * m_itm
            return c_part + m_part + out_block_bytes

        if N <= self.n_tile_max:
            TN, n_blocks, mask_n, resident_c = N, 1, False, False
        else:
            # Resident C only when it (double-buffered) leaves room for the
            # streamed M tiles + output on this generation's VMEM (v7x gate).
            resident_c = (2 * c_total_bytes) <= int(0.40 * cap)
            TN = self.n_tile_max
            while TN > 128 and TN >= 2 * _round_up(N, 128):
                TN //= 2
            while TN > 128 and ws(TN, resident_c) > budget:
                TN //= 2
            if resident_c and ws(TN, True) > budget:
                resident_c = False
                while TN > 128 and ws(TN, False) > budget:
                    TN //= 2
            n_blocks = _cdiv(N, TN)
            mask_n = (N % TN) != 0

        working = ws(TN, resident_c)
        vmem_limit = int(min(max(working + (8 << 20), 32 << 20), (9 * cap) // 10))
        return TN, n_blocks, mask_n, resident_c, vmem_limit

    # ------------------------------------------------------------------
    def _apply(self, M):
        """C_scaled @ M for M of shape (N, K) -> (d, K).  M is never padded."""
        N, K = M.shape
        assert N == self.N, f"expected N={self.N}, got {N}"
        d_rows = self.d_pad8
        m_itm = M.dtype.itemsize
        c_itm = self.C_row.dtype.itemsize
        c_total = self.C_row.size * c_itm

        TK = _pick_k_tile(K, self.K_TILE_MAX)
        tkb = K if TK is None else TK          # block width along K (full-K allowed)
        k_blocks = 1 if TK is None else K // TK

        out_block_bytes = 2 * d_rows * tkb * 4
        TN, n_blocks, mask_n, resident_c, vmem_limit = self._plan_n(
            tile_cols_m=tkb, tile_rows_m=0, c_total_bytes=c_total,
            c_row_major=True, m_itm=m_itm, c_itm=c_itm,
            out_block_bytes=out_block_bytes)

        if resident_c:
            c_spec = pl.BlockSpec((d_rows, self.N_pad), lambda j, n: (0, 0))
        else:
            c_spec = pl.BlockSpec((d_rows, TN), lambda j, n: (0, n))

        kernel = functools.partial(_sketch_kernel, block_n=TN, n_valid=N,
                                   mask_n=mask_n, resident_c=resident_c)

        c_bytes_hbm = c_total if resident_c else k_blocks * d_rows * n_blocks * TN * c_itm
        out = pl.pallas_call(
            kernel,
            out_shape=jax.ShapeDtypeStruct((d_rows, K), jnp.float32),
            grid=(k_blocks, n_blocks),
            in_specs=[
                c_spec,                                            # folded operator
                pl.BlockSpec((TN, tkb), lambda j, n: (n, j)),      # streamed M tile
            ],
            out_specs=pl.BlockSpec((d_rows, tkb), lambda j, n: (0, j)),
            compiler_params=pltpu.CompilerParams(
                dimension_semantics=("parallel", "arbitrary"),
                vmem_limit_bytes=vmem_limit),
            cost_estimate=pl.CostEstimate(
                flops=2 * d_rows * n_blocks * TN * K,
                transcendentals=0,
                bytes_accessed=int(N * K * m_itm + c_bytes_hbm + d_rows * K * 4)),
        )(self.C_row, M)
        return out if d_rows == self.d else out[: self.d]

    def _apply_t(self, Mt):
        """M_t @ C_scaled.T for already-transposed M_t of shape (K, N) -> (K, d)."""
        K, N = Mt.shape
        assert N == self.N, f"expected N={self.N}, got {N}"
        d_lanes = self.d_pad128
        m_itm = Mt.dtype.itemsize
        c_itm = self.C_colT.dtype.itemsize
        ct_total = self.C_colT.size * c_itm

        if K <= self.K_TILE_MAX:
            TR = K                                   # full-K rows: no padding, no mask
            if K >= 256 and (K % 16) == 0:
                TR = K // 2                          # give both v7x cores a block
        else:
            TR = self.K_TILE_MAX                     # tail rows are OOB-dropped on write
        r_blocks = _cdiv(K, TR)

        out_block_bytes = 2 * TR * d_lanes * 4
        TN, n_blocks, mask_n, resident_c, vmem_limit = self._plan_n(
            tile_cols_m=0, tile_rows_m=TR, c_total_bytes=ct_total,
            c_row_major=False, m_itm=m_itm, c_itm=c_itm,
            out_block_bytes=out_block_bytes)

        if resident_c:
            ct_spec = pl.BlockSpec((self.N_pad, d_lanes), lambda i, n: (0, 0))
        else:
            ct_spec = pl.BlockSpec((TN, d_lanes), lambda i, n: (n, 0))

        kernel = functools.partial(_sketch_t_kernel, block_n=TN, n_valid=N,
                                   mask_n=mask_n, resident_c=resident_c)

        c_bytes_hbm = ct_total if resident_c else r_blocks * n_blocks * TN * d_lanes * c_itm
        out = pl.pallas_call(
            kernel,
            out_shape=jax.ShapeDtypeStruct((K, d_lanes), jnp.float32),
            grid=(r_blocks, n_blocks),
            in_specs=[
                pl.BlockSpec((TR, TN), lambda i, n: (i, n)),       # streamed M_t tile
                ct_spec,                                           # folded operator^T
            ],
            out_specs=pl.BlockSpec((TR, d_lanes), lambda i, n: (i, 0)),
            compiler_params=pltpu.CompilerParams(
                dimension_semantics=("parallel", "arbitrary"),
                vmem_limit_bytes=vmem_limit),
            cost_estimate=pl.CostEstimate(
                flops=2 * K * n_blocks * TN * d_lanes,
                transcendentals=0,
                bytes_accessed=int(K * N * m_itm + c_bytes_hbm + K * d_lanes * 4)),
        )(Mt, self.C_colT)
        return out if d_lanes == self.d else out[:, : self.d]

    # ------------------------------------------------------------------
    def forward(self, M, transpose=False):
        if M.ndim == 1:
            # torch .t() on a 1-D tensor is a no-op, so the transpose flag
            # does not change the 1-D path.  Full-K(=1) block: no 128x blow-up.
            return self._apply(M.reshape(self.N, 1))[:, 0]
        if M.ndim != 2:
            raise ValueError("M must be 1-D or 2-D")
        if not transpose:
            return self._apply(M)
        # transpose=True: the caller hands M already transposed, shape (K, N);
        # contract over its last axis directly (no wrapper .T round trips).
        return self._apply_t(M)

    def reference(self, M, transpose=False):
        """Pure-jnp reference of the same math (for verification only)."""
        C = jnp.asarray(_idct_full_matrix_np(self.N))
        if transpose:
            M = M.T
        if M.ndim == 2:
            result = (C @ (self.D[:, None] * M))[self.P, :]
        else:
            result = (C @ (self.D * M))[self.P]
        if transpose:
            result = result.T
        return result


if __name__ == "__main__":
    key = jax.random.PRNGKey(0)
    k_op, k_M, k_v, k_op2, k_M2 = jax.random.split(key, 5)

    # Case 1: tiny shapes, full-dim (unpadded) blocks, 2-D / 1-D / transpose.
    d, N, K = 8, 32, 16
    op = SRFTSketchOpPallas(d, N, k_op)

    M = jax.random.normal(k_M, (N, K), dtype=jnp.float32)
    out = jax.block_until_ready(op.forward(M))
    ref = op.reference(M)
    assert out.shape == (d, K)
    assert jnp.allclose(out, ref, atol=1e-3, rtol=1e-3)

    v = jax.random.normal(k_v, (N,), dtype=jnp.float32)
    out_v = jax.block_until_ready(op.forward(v))
    ref_v = op.reference(v)
    assert out_v.shape == (d,)
    assert jnp.allclose(out_v, ref_v, atol=1e-3, rtol=1e-3)

    out_t = jax.block_until_ready(op.forward(M.T, transpose=True))
    assert out_t.shape == (K, d)
    assert jnp.allclose(out_t, ref.T, atol=1e-3, rtol=1e-3)

    # Case 2: unaligned d/N with a small n_tile_max to exercise the N-tail
    # mask, resident-C in-kernel slicing, K tiling (2 parallel blocks), the
    # d-row padding slice, and the lane-dense transposed output.
    d2, N2, K2 = 20, 300, 256
    op2 = SRFTSketchOpPallas(d2, N2, k_op2, n_tile_max=128)
    M2 = jax.random.normal(k_M2, (N2, K2), dtype=jnp.float32)

    out2 = jax.block_until_ready(op2.forward(M2))
    ref2 = op2.reference(M2)
    assert out2.shape == (d2, K2)
    assert jnp.allclose(out2, ref2, atol=1e-3, rtol=1e-3)

    out2_t = jax.block_until_ready(op2.forward(M2.T, transpose=True))
    assert out2_t.shape == (K2, d2)
    assert jnp.allclose(out2_t, ref2.T, atol=1e-3, rtol=1e-3)

    print("KERNEL_OK")
</pallas_src>

<mosaic_0001>
module attributes {stable_mosaic.version = 11 : i64} {
  func.func @_sketch_kernel(%arg0: i32, %arg1: i32, %arg2: memref<8x32xf32, #tpu.memory_space<vmem>>, %arg3: memref<32x16xf32, #tpu.memory_space<vmem>>, %arg4: memref<8x16xf32, #tpu.memory_space<vmem>>) attributes {dimension_semantics = [#tpu.dimension_semantics<parallel>, #tpu.dimension_semantics<arbitrary>], iteration_bounds = array<i64: 1, 1>, scalar_prefetch = 0 : i64, scratch_operands = 0 : i64, tpu.core_type = #tpu.core_type<tc>, window_params = [{transform_indices = @transform_0, window_bounds = array<i64: 8, 32>}, {transform_indices = @transform_1, window_bounds = array<i64: 32, 16>}, {transform_indices = @transform_2, window_bounds = array<i64: 8, 16>}]} {
    %c0_i32 = arith.constant 0 : i32
    %0 = arith.cmpi eq, %arg1, %c0_i32 : i32
    %1 = arith.extui %0 : i1 to i32
    %c0_i32_0 = arith.constant 0 : i32
    %2 = arith.cmpi ne, %1, %c0_i32_0 : i32
    scf.if %2 {
      %cst_8 = arith.constant 0.000000e+00 : f32
      %9 = vector.broadcast %cst_8 : f32 to vector<8x16xf32>
      %c0_9 = arith.constant 0 : index
      %c0_10 = arith.constant 0 : index
      %10 = vector.load %arg4[%c0_9, %c0_10] : memref<8x16xf32, #tpu.memory_space<vmem>>, vector<8x16xf32>
      tpu.vector_store %arg4[%c0_9, %c0_10], %9 {strides = array<i32>} : memref<8x16xf32, #tpu.memory_space<vmem>>, vector<8x16xf32>,
    } else {
    }
    %c0 = arith.constant 0 : index
    %c0_1 = arith.constant 0 : index
    %3 = vector.load %arg2[%c0, %c0_1] : memref<8x32xf32, #tpu.memory_space<vmem>>, vector<8x32xf32>
    %c0_2 = arith.constant 0 : index
    %c0_3 = arith.constant 0 : index
    %4 = vector.load %arg3[%c0_2, %c0_3] : memref<32x16xf32, #tpu.memory_space<vmem>>, vector<32x16xf32>
    %c0_4 = arith.constant 0 : index
    %c0_5 = arith.constant 0 : index
    %5 = vector.load %arg4[%c0_4, %c0_5] : memref<8x16xf32, #tpu.memory_space<vmem>>, vector<8x16xf32>
    %cst = arith.constant dense<0.000000e+00> : vector<8x16xf32>
    %6 = tpu.matmul %3, %4, %cst {dimension_numbers = #tpu.dot_dimension_numbers<[1], [0], [0], [1], [0, 0, 1, 1], [], []>} : vector<8x32xf32>, vector<32x16xf32>, vector<8x16xf32> -> vector<8x16xf32>
    %7 = arith.addf %5, %6 : vector<8x16xf32>
    %c0_6 = arith.constant 0 : index
    %c0_7 = arith.constant 0 : index
    %8 = vector.load %arg4[%c0_6, %c0_7] : memref<8x16xf32, #tpu.memory_space<vmem>>, vector<8x16xf32>
    tpu.vector_store %arg4[%c0_6, %c0_7], %7 {strides = array<i32>} : memref<8x16xf32, #tpu.memory_space<vmem>>, vector<8x16xf32>,
    return
  }
  func.func @transform_0(%arg0: i32, %arg1: i32) -> (i32, i32) {
    %c0_i32 = arith.constant 0 : i32
    %c0_i32_0 = arith.constant 0 : i32
    return %c0_i32, %arg1 : i32, i32
  }
  func.func @transform_1(%arg0: i32, %arg1: i32) -> (i32, i32) {
    %c0_i32 = arith.constant 0 : i32
    return %arg1, %arg0 : i32, i32
  }
  func.func @transform_2(%arg0: i32, %arg1: i32) -> (i32, i32) {
    %c0_i32 = arith.constant 0 : i32
    %c0_i32_0 = arith.constant 0 : i32
    return %c0_i32, %arg0 : i32, i32
  }
}

</mosaic_0001>

<bundles_post_ra>
// kernel: tpu_custom_call.1
= control target key start
LH: loop header
LB: loop body
LE: loop exit
PB: predicated region body
PF: predicated region fallthrough
CT: control target
= control target key end

     0   :  { %v157_v1 = vmov 0.0   ;;  %vm158_vm0 = vmmov 0   ;;  %vm16_vm1 = vcmask 130048   ;;  %s195_s0 = inlined_call_operand.vmem [shape: f32[8,32], index: 0, kind: input, shape index: {}]   ;;  %s196_s1 = inlined_call_operand.vmem [shape: f32[32,16], index: 1, kind: input, shape index: {}]   ;;  %s197_s2 = inlined_call_operand.hbm [shape: f32[8,16], index: 2, kind: output, shape index: {}]  }
   0x1   :  { %v22_v0 = vld [vmem:[%s196_s1 + $0x18] sm:$0xff]  ;;  %121 = vmatprep.subr.mxu0 %v157_v1  ;;  %v21_v2 = vld [vmem:[%s196_s1 + $0x10] sm:$0xff]  ;;  %129 = vmatprep.mubr.msk.f32.mxu0 %vm158_vm0, %v157_v1 }
   0x2   :  { %7 = vsyncpa [#allocation3], 0  ;;  %122 = vmatpush3.msra.mxu0 %v22_v0  ;;  %17 = vst.msk [vmem:[#allocation2] sm:$0xff] %vm16_vm1, %v157_v1  ;;  %v20_v3 = vld [vmem:[%s196_s1 + $0x8] sm:$0xff]  ;;  %v19_v4 = vld [vmem:[%s196_s1] sm:$0xff]  ;;  %vm24_vm2 = vcmask 261120  }
   0x3   :  { %123 = vmatprep.subr.mxu0 %v157_v1  ;;  %v18_v5 = vld [vmem:[%s195_s0] sm:$0xff]  ;;  %s159_s19 = smov [#allocation2]  }
   0x4   :  { %124 = vmatpush3.msra.mxu0 %v21_v2  ;;  %s107_s20 = sshll.u32 %s159_s19, 4  ;;  %s108_s20 = int_to_ptr.vmem [resolvable:$true] %s107_s20 }
   0x5   :  { %125 = vmatprep.subr.mxu0 %v157_v1  ;;  %s135_s21 = scalar_lea.vmem %s108_s20, 128  ;;  %p140_p1 = scmp.lt.s32.totalorder %s108_s20, %s108_s20 }
   0x6   :  { %126 = vmatpush3.msra.mxu0 %v20_v3  ;;  %p136_p0 = scmp.ne.s32.totalorder %s108_s20, %s135_s21  ;;  %p141_p2 = scmp.lt.s32.totalorder %s135_s21, %s135_s21 }
   0x7   :  { %127 = vmatprep.subr.mxu0 %v157_v1 }
   0x8   :  { %128 = vmatpush3.msra.mxu0 %v19_v4  ;;  %p142_p3 = por %p141_p2, %p140_p1 }
   0x9   :  { %130 = vmatmul.mubr.msk.f32.vlgmr.msra.gmra.mxu0 %vm24_vm2, %v18_v5  ;;  %v23_v6 = vld [vmem:[#allocation2] sm:$0xff] }
   0xa   :  { %p143_p4 = pnand %p142_p3, %p136_p0 }
  0xc9   :  { %v94_v7 = vpop.f32.mrf.mxu0 }
  0xca   :  { %v98_v8 = vadd.f32 %v94_v7, %v23_v6 }
  0xcb   :  { %v131_v9 = vpop.f32.mrf.mxu0 }
  0xcc   :  { %100 = vst.msk [vmem:[#allocation2] sm:$0xff] %vm16_vm1, %v98_v8 }
  0xcd   :  { %146 = shalt.err (!%p143_p4)
}
  0xce   :  { %110 = dma.vmem_to_hbm [thread:$0]  %s108_s20, 128, %s197_s2, [#allocation3]  }
  0xcf   :  { %155 = dma.done.wait [#allocation3], 128  }
  0xd0   :  { %156 = vsyncadd [#allocation3], 4294967168 }
  0xd1   :  { %114 = vsyncpa [#allocation3], 1 }

</bundles_post_ra>
